<compile_context>
chip_gen: v7x
topology: tpu7x:2x2x1
jax: 0.10.0
libtpu: 0.0.40
codegen_flags: <defaults>
</compile_context>

<pallas_src>
import jax
import jax.numpy as jnp
from jax.experimental import pallas as pl
from jax.experimental.pallas import tpu as pltpu


_PALLAS_MIN_ELEMENTS = 256 * 1024       # below this, XLA's fused add wins
_DEGENERATE_TILE_BYTES = 256 * 1024     # tiles smaller than this are overhead-bound


def _pos_encoding_kernel(x_ref, pe_ref, o_ref):
    # (tq, d) tiles in VMEM — a single lane-aligned VPU add.
    o_ref[...] = x_ref[...] + pe_ref[...]


def make_sinusoidal_pe(seq_len: int, d_embedding: int) -> jnp.ndarray:
    """Pre-calculated sinusoidal positional encodings (seq_len, d_embedding).

    Handles odd d_embedding (sin gets ceil(d/2) columns, cos gets floor(d/2)).
    """
    pos = jnp.arange(seq_len, dtype=jnp.float32)[:, None]           # (S, 1)
    half = (d_embedding + 1) // 2
    i = jnp.arange(half, dtype=jnp.float32)[None, :]                 # (1, ceil(D/2))
    angle = pos / jnp.power(10000.0, (2.0 * i) / d_embedding)        # (S, ceil(D/2))
    pe = jnp.zeros((seq_len, d_embedding), dtype=jnp.float32)
    pe = pe.at[:, 0::2].set(jnp.sin(angle))
    pe = pe.at[:, 1::2].set(jnp.cos(angle[:, : d_embedding // 2]))
    return pe


def _vmem_budget():
    """Returns (per-buffer tile byte cap, vmem_limit_bytes) for this TPU gen."""
    try:
        vmem_cap = int(pltpu.get_tpu_info().vmem_capacity_bytes)
    except Exception:
        vmem_cap = 64 * 1024 * 1024            # conservative (v7x-sized) default
    if vmem_cap >= 100 * 1024 * 1024:          # v5e / v6e: 128 MiB physical VMEM
        return 8 * 1024 * 1024, 64 * 1024 * 1024
    return 6 * 1024 * 1024, 48 * 1024 * 1024   # v7x: 64 MiB physical VMEM


def _pick_row_tile(seq_eff: int, row_bytes: int, sublane: int, tile_cap: int):
    """Largest multiple-of-`sublane` divisor of seq_eff whose tile fits tile_cap.

    Returns None when seq_eff is not a multiple of the packed sublane tile
    (no legal row tiling for the 2-D grid).
    """
    if seq_eff % sublane != 0:
        return None
    rows_cap = max(sublane, (tile_cap // max(row_bytes, 1)) // sublane * sublane)
    target = min(rows_cap, seq_eff)
    tq = sublane
    t = sublane
    while t <= target:
        if seq_eff % t == 0:
            tq = t
        t += sublane
    # Megacore heuristic: if seq collapses to a single block but each half is
    # still a substantial tile, split it so both v7x TensorCores get work.
    if (
        tq == seq_eff
        and (seq_eff // 2) % sublane == 0
        and (seq_eff // 2) * row_bytes >= (1 << 20)
    ):
        tq = seq_eff // 2
    return tq


def encoder_forward(x: jnp.ndarray, pe: jnp.ndarray, *, force_pallas: bool = False) -> jnp.ndarray:
    """Applies pre-calculated positional encodings:  out = x + pe[None, :, :].

    x:  (batch, seq, d_embedding)
    pe: (seq, d_embedding) — cast to x.dtype, so the add is performed in
        x.dtype (bf16 inputs add in bf16; ~1 ulp vs an fp32-accumulate ref).

    Tiny shapes or shapes with no legal TPU row tiling fall back to XLA's
    fused add (this also applies under force_pallas when seq is not a
    multiple of the packed sublane tile — documented, not silent).
    """
    batch, seq, d = x.shape
    assert pe.shape == (seq, d), f"pe shape {pe.shape} != {(seq, d)}"
    pe = pe.astype(x.dtype)

    def xla_add():
        return x + pe[None, :, :]

    if (not force_pallas) and x.size < _PALLAS_MIN_ELEMENTS:
        return xla_add()

    itemsize = jnp.dtype(x.dtype).itemsize
    sublane = max(8, 32 // itemsize)          # 8 / 16 / 32 rows for 4 / 2 / 1-byte dtypes

    # Narrow-width fold: d < 128 with 128 % d == 0 -> fold k rows per lane-row
    # via a free reshape (no extra HBM traffic, lane-dense stores).
    seq_eff, d_eff = seq, d
    if d < 128 and 128 % d == 0:
        k = 128 // d
        if seq % k == 0 and (seq // k) % sublane == 0:
            seq_eff, d_eff = seq // k, 128

    tile_cap, vmem_limit = _vmem_budget()
    row_bytes = d_eff * itemsize
    tq = _pick_row_tile(seq_eff, row_bytes, sublane, tile_cap)
    if tq is None:
        # seq not a multiple of the packed sublane tile: no legal row tiling.
        return xla_add()

    tile_bytes = tq * row_bytes
    if (not force_pallas) and tile_bytes < _DEGENERATE_TILE_BYTES:
        # e.g. seq = 8 * large-prime: per-step pipeline overhead would dominate.
        return xla_add()
    # 3 operands x 2 pipeline buffers must fit the scoped VMEM budget.
    vmem_limit = max(vmem_limit, 6 * tile_bytes + (2 << 20))

    rows = batch * seq_eff
    n_seq_blocks = seq_eff // tq
    x_flat = x.reshape(rows, d_eff)
    pe_flat = pe.reshape(seq_eff, d_eff)

    out_flat = pl.pallas_call(
        _pos_encoding_kernel,
        out_shape=jax.ShapeDtypeStruct((rows, d_eff), x.dtype),
        grid_spec=pltpu.PrefetchScalarGridSpec(
            num_scalar_prefetch=0,
            grid=(n_seq_blocks, batch),   # batch innermost -> PE block reused
            in_specs=[
                pl.BlockSpec((tq, d_eff), lambda s, b: (b * n_seq_blocks + s, 0)),
                pl.BlockSpec((tq, d_eff), lambda s, b: (s, 0)),
            ],
            out_specs=pl.BlockSpec((tq, d_eff), lambda s, b: (b * n_seq_blocks + s, 0)),
        ),
        compiler_params=pltpu.CompilerParams(
            dimension_semantics=("parallel", "arbitrary"),
            vmem_limit_bytes=vmem_limit,
        ),
    )(x_flat, pe_flat)

    return out_flat.reshape(batch, seq, d)


if __name__ == "__main__":
    # --- Small demo shape (forced through the Pallas path) --------------------
    batch, seq, d_embedding = 2, 8, 32
    key = jax.random.PRNGKey(0)
    x = jax.random.normal(key, (batch, seq, d_embedding), dtype=jnp.float32)
    pe = make_sinusoidal_pe(seq, d_embedding)
    out = jax.block_until_ready(encoder_forward(x, pe, force_pallas=True))
    ref = x + pe[None, :, :]
    assert out.shape == (batch, seq, d_embedding)
    assert jnp.allclose(out, ref, atol=1e-6), "mismatch vs reference (small)"

    # --- Medium shape: row tiling + PE reuse across the batch axis ------------
    b2, s2, d2 = 2, 1024, 256
    x2 = jax.random.normal(jax.random.PRNGKey(1), (b2, s2, d2), dtype=jnp.float32)
    pe2 = make_sinusoidal_pe(s2, d2)
    out2 = jax.block_until_ready(encoder_forward(x2, pe2))
    ref2 = x2 + pe2[None, :, :]
    assert jnp.allclose(out2, ref2, atol=1e-6), "mismatch vs reference (medium)"

    # --- Non-multiple-of-128 width: full-extent last-dim block, no pad pass ---
    b3, s3, d3 = 2, 512, 160
    x3 = jax.random.normal(jax.random.PRNGKey(2), (b3, s3, d3), dtype=jnp.float32)
    pe3 = make_sinusoidal_pe(s3, d3)
    out3 = jax.block_until_ready(encoder_forward(x3, pe3, force_pallas=True))
    ref3 = x3 + pe3[None, :, :]
    assert jnp.allclose(out3, ref3, atol=1e-6), "mismatch vs reference (ragged width)"

    print("KERNEL_OK")
</pallas_src>

<mosaic_0001>
module attributes {stable_mosaic.version = 11 : i64} {
  func.func @_pos_encoding_kernel(%arg0: i32, %arg1: i32, %arg2: memref<8x32xf32, #tpu.memory_space<vmem>>, %arg3: memref<8x32xf32, #tpu.memory_space<vmem>>, %arg4: memref<8x32xf32, #tpu.memory_space<vmem>>) attributes {dimension_semantics = [#tpu.dimension_semantics<parallel>, #tpu.dimension_semantics<arbitrary>], iteration_bounds = array<i64: 1, 2>, scalar_prefetch = 0 : i64, scratch_operands = 0 : i64, tpu.core_type = #tpu.core_type<tc>, window_params = [{transform_indices = @transform_0, window_bounds = array<i64: 8, 32>}, {transform_indices = @transform_1, window_bounds = array<i64: 8, 32>}, {transform_indices = @transform_2, window_bounds = array<i64: 8, 32>}]} {
    %c0 = arith.constant 0 : index
    %c0_0 = arith.constant 0 : index
    %0 = vector.load %arg2[%c0, %c0_0] : memref<8x32xf32, #tpu.memory_space<vmem>>, vector<8x32xf32>
    %c0_1 = arith.constant 0 : index
    %c0_2 = arith.constant 0 : index
    %1 = vector.load %arg3[%c0_1, %c0_2] : memref<8x32xf32, #tpu.memory_space<vmem>>, vector<8x32xf32>
    %2 = arith.addf %0, %1 : vector<8x32xf32>
    %c0_3 = arith.constant 0 : index
    %c0_4 = arith.constant 0 : index
    %3 = vector.load %arg4[%c0_3, %c0_4] : memref<8x32xf32, #tpu.memory_space<vmem>>, vector<8x32xf32>
    tpu.vector_store %arg4[%c0_3, %c0_4], %2 {strides = array<i32>} : memref<8x32xf32, #tpu.memory_space<vmem>>, vector<8x32xf32>,
    return
  }
  func.func @transform_0(%arg0: i32, %arg1: i32) -> (i32, i32) {
    %c1_i32 = arith.constant 1 : i32
    %0 = arith.muli %arg1, %c1_i32 : i32
    %1 = arith.addi %0, %arg0 : i32
    %c0_i32 = arith.constant 0 : i32
    %c0_i32_0 = arith.constant 0 : i32
    return %1, %c0_i32 : i32, i32
  }
  func.func @transform_1(%arg0: i32, %arg1: i32) -> (i32, i32) {
    %c0_i32 = arith.constant 0 : i32
    %c0_i32_0 = arith.constant 0 : i32
    return %arg0, %c0_i32 : i32, i32
  }
  func.func @transform_2(%arg0: i32, %arg1: i32) -> (i32, i32) {
    %c1_i32 = arith.constant 1 : i32
    %0 = arith.muli %arg1, %c1_i32 : i32
    %1 = arith.addi %0, %arg0 : i32
    %c0_i32 = arith.constant 0 : i32
    %c0_i32_0 = arith.constant 0 : i32
    return %1, %c0_i32 : i32, i32
  }
}

</mosaic_0001>

<bundles_post_ra>
// kernel: tpu_custom_call.1
= control target key start
LH: loop header
LB: loop body
LE: loop exit
PB: predicated region body
PF: predicated region fallthrough
CT: control target
= control target key end

     0   :  { %7 = vsyncpa [#allocation3], 0  ;;  %s778_s0 = inlined_call_operand.hbm [shape: f32[16,32], index: 0, kind: input, shape index: {}]   ;;  %s779_s1 = inlined_call_operand.hbm [shape: f32[8,32], index: 1, kind: input, shape index: {}]   ;;  %s780_s2 = inlined_call_operand.hbm [shape: f32[16,32], index: 2, kind: output, shape index: {}]  }
   0x1   :  { %9 = vsyncpa [#allocation3 + $0x1], 0 }
   0x2   :  { %10 = vsyncpa [#allocation6], 0 }
   0x3   :  { %11 = vsyncpa [#allocation4], 0 }
   0x4   :  { %13 = vsyncpa [#allocation4 + $0x1], 0  ;;  %s562_s9 = smov 0   ;;  %s564_s10 = smov 0  }
   0x5   :  { %s566_s11 = smov 0   ;;  %s568_s12 = smov 0  }
   0x6   :  { %s570_s13 = smov 0   ;;  %s572_s14 = smov 0  }
   0x7 LB: > { %s310_s15 = sadd.s32 4294967295, %s542_s14   ;;  %s311_s16 = sadd.s32 4294967294, %s542_s14   ;;  %s542_s14 = sphi %s572_s14, %s19_s14   ;;  %s538_s13 = sphi %s570_s13, %s805_s13   ;;  %s534_s12 = sphi %s568_s12, %s804_s12   ;;  %s530_s11 = sphi %s566_s11, %s803_s11   ;;  %s526_s10 = sphi %s564_s10, %s802_s10   ;;  %s522_s9 = sphi %s562_s9, %s801_s9  }
   0x8   : > { %p53_p0 = scmp.ne.s32.totalorder %s526_s10, %s522_s9  ;;  %p596_p1 = scmp.eq.s32.totalorder %s310_s15, 0 }
   0x9   : > { %p600_p2 = scmp.eq.s32.totalorder %s310_s15, 1  ;;  %p111_p3 = scmp.eq.s32.totalorder %s311_s16, 1 }
   0xa   : > { %s785_s17 = scalar_select %p596_p1, 1, 0 }
   0xb   : > { %s786_s18 = scalar_select %p600_p2, 1, 0 }
   0xc   : > { %p606_p4 = por %p596_p1, %p53_p0  ;;  %p312_p5 = scmp.ge.s32.totalorder %s542_s14, 1 }
   0xd   : > { %p611_p6 = por %p111_p3, %p53_p0  ;;  %p118_p7 = scmp.lt.s32.totalorder %s542_s14, 3 }
   0xe   : > { %s787_s19 = scalar_select %p606_p4, 1, 0 }
   0xf   : > { %s788_s20 = scalar_select %p611_p6, 1, 0 }
  0x10   : > { %p616_p8 = pnand %p312_p5, %p118_p7  ;;  %s544_s22 = smov [#allocation5]  }
  0x11   : > { %s133_s23 = sshll.u32 %s544_s22, 4  ;;  %s28_s25 = sadd.s32 1, %s538_s13  ;;  %s134_s23 = int_to_ptr.vmem [resolvable:$true] %s133_s23 }
  0x12   : > { %s789_s21 = scalar_select %p616_p8, 1, 0 }
  0x13   : > { %p333_p10 = pneg %p616_p8  ;;  %s40_s26 = sadd.s32 1, %s530_s11 }
  0x14   : > { %p631_p12 = scmp.ge.s32.totalorder %s28_s25, 2  ;;  %s398_s30 = scalar_lea.hbm %s779_s1, 128 }
  0x15   : > { %p625_p11 = pnand %p333_p10, %p596_p1  ;;  %p399_p13 = scmp.ne.s32.totalorder %s779_s1, %s398_s30 }
  0x16   : > { %s791_s27 = scalar_select %p631_p12, 1, 0 }
  0x17   : > { %p400_p0 = pneg %p625_p11  ;;  %p405_p7 = scmp.lt.u32.totalorder %s398_s30, %s779_s1 }
  0x19   : > { %p401_p3 = pnand %p400_p0, %p399_p13 }
  0x1b   : > { %p402_p5 = pneg %p401_p3 }
  0x1d   : > { %p407_p10 = pnand %p405_p7, %p402_p5 }
  0x1f   : > { %410 = shalt.err (!%p407_p10)
}
  0x20   : > { %s411_s7 = scalar_lea.vmem %s134_s23, 128  ;;  %p419_p4 = scmp.lt.s32.totalorder %s134_s23, %s134_s23 }
  0x21   : > { %p412_p9 = scmp.ne.s32.totalorder %s134_s23, %s411_s7  ;;  %p420_p8 = scmp.lt.s32.totalorder %s411_s7, %s411_s7 }
  0x23   : > { %p414_p6 = pnand %p412_p9, %p400_p0  ;;  %p421_p2 = por %p420_p8, %p419_p4 }
  0x25   : > { %p415_p1 = pneg %p414_p6 }
  0x27   : > { %p422_p12 = pnand %p421_p2, %p415_p1 }
  0x29   : > { %425 = shalt.err (!%p422_p12)
}
  0x2a   : > { %336 = dma.hbm_to_vmem [thread:$0]  (!%p625_p11), %s779_s1, 128, %s134_s23, [#allocation6]  }
  0x2b   : > { %p792_p4 = scmp.ne.s32.totalorder %s791_s27, 0  ;;  %p47_p1 = scmp.ne.s32.totalorder %s530_s11, %s526_s10 }
  0x2c   : > { %p48_p2 = scmp.eq.s32.totalorder %s542_s14, 0  ;;  %p346_p6 = scmp.lt.s32.totalorder %s542_s14, 2 }
  0x2d   : > { %s807_s25 = smov (%p792_p4, %s28_s25), 0  ;;  %p793_p12 = scmp.ne.s32.totalorder %s786_s18, 0 }
  0x2e   : > { %s37_s16 = ssub.s32 %s538_s13, %s807_s25  ;;  %p49_p9 = por %p48_p2, %p47_p1 }
  0x2f   : > { %p38_p8 = scmp.eq.s32.totalorder %s37_s16, 0  ;;  %p663_p13 = por %p793_p12, %p47_p1 }
  0x30   : > { %s144_s24 = sand.u32 1, %s530_s11   ;;  %s316_s27 = sshll.u32 %s538_s13, 7 }
  0x31   : > { %s671_s28 = scalar_select %p38_p8, %s530_s11, %s40_s26  }
  0x32   : > { %s315_s23 = sshll.u32 %s144_s24, 3  ;;  %s677_s3 = scalar_lea.hbm %s778_s0, %s316_s27 }
  0x33   : > { %s148_s18 = scalar_lea.vmem [#allocation2], %s315_s23  ;;  %p681_p11 = pnand %p346_p6, %p49_p9 }
  0x34   : > { %s156_s4 = sshll.u32 %s148_s18, 4  ;;  %s145_s26 = scalar_lea.sflag [#allocation3], %s144_s24  ;;  %s679_s4 = int_to_ptr.vmem [resolvable:$true] %s156_s4 }
  0x35   : > { %s426_s6 = scalar_lea.hbm %s677_s3, 128  ;;  %p428_p3 = pneg %p681_p11 }
  0x36   : > { %p427_p0 = scmp.ne.s32.totalorder %s677_s3, %s426_s6  ;;  %s431_s15 = scalar_lea.hbm %s778_s0, 256 }
  0x37   : > { %p432_p10 = scmp.lt.u32.totalorder %s677_s3, %s778_s0  ;;  %p433_p4 = scmp.lt.u32.totalorder %s431_s15, %s426_s6 }
  0x38   : > { %p429_p5 = pnand %p428_p3, %p427_p0  ;;  %p435_p2 = scmp.lt.u32.totalorder %s426_s6, %s677_s3 }
  0x39   : > { %p434_p1 = por %p433_p4, %p432_p10 }
  0x3a   : > { %p430_p7 = pneg %p429_p5 }
  0x3b   : > { %p436_p6 = por %p435_p2, %p434_p1 }
  0x3d   : > { %p437_p8 = pnand %p436_p6, %p430_p7 }
  0x3f   : > { %440 = shalt.err (!%p437_p8)
}
  0x40   : > { %s441_s24 = scalar_lea.vmem %s679_s4, 128  ;;  %s545_s27 = smov [#allocation2]  }
  0x41   : > { %p442_p9 = scmp.ne.s32.totalorder %s679_s4, %s441_s24  ;;  %s446_s29 = sshll.u32 %s545_s27, 4  ;;  %s447_s29 = int_to_ptr.vmem [resolvable:$false] %s446_s29 }
  0x42   : > { %s448_s30 = scalar_lea.vmem %s447_s29, 256  ;;  %p449_p5 = scmp.lt.s32.totalorder %s679_s4, %s447_s29 }
  0x43   : > { %p444_p12 = pnand %p442_p9, %p428_p3  ;;  %p450_p10 = scmp.lt.s32.totalorder %s448_s30, %s441_s24 }
  0x45   : > { %p445_p0 = pneg %p444_p12  ;;  %p451_p4 = por %p450_p10, %p449_p5 }
  0x47   : > { %p452_p1 = pnand %p451_p4, %p445_p0 }
  0x49   : > { %455 = shalt.err (!%p452_p1)
}
  0x4a   : > { %340 = dma.hbm_to_vmem [thread:$0]  (!%p681_p11), %s677_s3, 128, %s679_s4, %s145_s26  }
  0x4b   : > { %p796_p7 = scmp.ne.s32.totalorder %s789_s21, 0 }
  0x4c   : > { %s713_s18 = sand.u32 (!%p796_p7), 1, %s526_s10   ;;  %p797_p3 = scmp.ne.s32.totalorder (!%p796_p7), %s787_s19, 0 }
  0x4d   : > { %165 = sbr.rel (%p796_p7) target bundleno = 113 (0x71), region = 28  ;;  %s318_s6 = sshll.u32 (!%p796_p7), %s713_s18, 3 }
  0x4e   : > { %s168_s7 = scalar_lea.sflag (!%p796_p7), [#allocation3], %s713_s18  ;;  %s171_s8 = scalar_lea.vmem (!%p796_p7), [#allocation2], %s318_s6 }
  0x54   : > { %509 = dma.done.wait (%p797_p3), %s168_s7, 128  }
  0x55   : > { %511 = vsyncadd (%p797_p3), %s168_s7, 4294967168  ;;  %p798_p2 = scmp.ne.s32.totalorder %s785_s17, 0 }
  0x57   : > { %513 = dma.done.wait (%p798_p2), [#allocation6], 128  }
  0x58   : > { %515 = vsyncadd (%p798_p2), [#allocation6], 4294967168  ;;  %s195_s21 = scalar_lea.vmem [#allocation7], %s318_s6  ;;  %s322_s4 = sshll.u32 %s534_s12, 7  ;;  %v198_v0 = vld [vmem:[%s171_s8] sm:$0xff]  ;;  %v199_v1 = vld [vmem:[#allocation5] sm:$0xff] }
  0x59   : > { %s218_s3 = sshll.u32 %s195_s21, 4  ;;  %vm201_vm0 = vcmask 261120   ;;  %v200_v2 = vadd.f32 %v199_v1, %v198_v0  ;;  %s731_s17 = scalar_lea.hbm %s780_s2, %s322_s4  ;;  %s726_s3 = int_to_ptr.vmem [resolvable:$true] %s218_s3 }
  0x5a   : > { %s204_s26 = scalar_lea.sflag [#allocation4], %s713_s18  ;;  %s456_s15 = scalar_lea.vmem %s726_s3, 128 }
  0x5b   : > { %202 = vst.msk [vmem:[%s195_s21] sm:$0xff] %vm201_vm0, %v200_v2  ;;  %p457_p11 = scmp.ne.s32.totalorder %s726_s3, %s456_s15  ;;  %s546_s12 = smov [#allocation7]  }
  0x5c   : > { %s460_s16 = sshll.u32 %s546_s12, 4  ;;  %s461_s16 = int_to_ptr.vmem [resolvable:$false] %s460_s16 }
  0x5d   : > { %p458_p6 = pnand %p457_p11, %p663_p13  ;;  %s462_s23 = scalar_lea.vmem %s461_s16, 256 }
  0x5e   : > { %p463_p9 = scmp.lt.s32.totalorder %s726_s3, %s461_s16  ;;  %p464_p12 = scmp.lt.s32.totalorder %s462_s23, %s456_s15 }
  0x5f   : > { %p459_p8 = pneg %p458_p6 }
  0x60   : > { %p465_p0 = por %p464_p12, %p463_p9 }
  0x62   : > { %p466_p5 = pnand %p465_p0, %p459_p8 }
  0x64   : > { %469 = shalt.err (!%p466_p5)
}
  0x65   : > { %s470_s24 = scalar_lea.hbm %s731_s17, 128  ;;  %s474_s30 = scalar_lea.hbm %s780_s2, 256 }
  0x66   : > { %p471_p10 = scmp.ne.s32.totalorder %s731_s17, %s470_s24  ;;  %p475_p7 = scmp.lt.u32.totalorder %s731_s17, %s780_s2 }
  0x67   : > { %p476_p3 = scmp.lt.u32.totalorder %s474_s30, %s470_s24  ;;  %p478_p11 = scmp.lt.u32.totalorder %s470_s24, %s731_s17 }
  0x68   : > { %p472_p4 = pnand %p471_p10, %p663_p13 }
  0x69   : > { %p477_p2 = por %p476_p3, %p475_p7 }
  0x6a   : > { %p473_p1 = pneg %p472_p4 }
  0x6b   : > { %p479_p6 = por %p478_p11, %p477_p2 }
  0x6d   : > { %p480_p8 = pnand %p479_p6, %p473_p1 }
  0x6f   : > { %483 = shalt.err (!%p480_p8)
}
  0x70   : > { %331 = dma.vmem_to_hbm [thread:$0]  (%p663_p13), %s726_s3, 128, %s731_s17, %s204_s26  }
  0x71 PF: > { %s230_s7 = sand.u32 1, %s522_s9   ;;  %p799_p9 = scmp.ne.s32.totalorder %s788_s20, 0 }
  0x72   : > { %p800_p12 = scmp.ge.s32.totalorder %s542_s14, 2  ;;  %s231_s8 = scalar_lea.sflag [#allocation4], %s230_s7 }
  0x74   : > { %p342_p0 = pnand %p800_p12, %p799_p9 }
  0x76   : > { %517 = dma.done.wait (!%p342_p0), %s231_s8, 128  }
  0x77   : > { %519 = vsyncadd (!%p342_p0), %s231_s8, 4294967168  ;;  %s19_s14 = sadd.s32 1, %s542_s14   ;;  %s801_s9 = smov %s526_s10 }
  0x78   : > { %p16_p5 = scmp.ge.s32.totalorder %s19_s14, 4   ;;  %s802_s10 = smov %s530_s11 }
  0x79   : > { %s803_s11 = smov %s671_s28  ;;  %s804_s12 = smov %s538_s13 }
  0x7a   : > { %s805_s13 = smov %s807_s25  ;;  %18 = sbr.rel (!%p16_p5) target bundleno = 7 (0x7), region = 78 }
  0x81   :  { %236 = vsyncpa [#allocation3], 1 }
  0x82   :  { %238 = vsyncpa [#allocation3 + $0x1], 1 }
  0x83   :  { %239 = vsyncpa [#allocation6], 1 }
  0x84   :  { %240 = vsyncpa [#allocation4], 1 }
  0x85   :  { %242 = vsyncpa [#allocation4 + $0x1], 1 }

</bundles_post_ra>
